<compile_context>
chip_gen: v6e
topology: v6e:2x2x1
jax: 0.10.0
libtpu: 0.0.40
codegen_flags: <defaults>
</compile_context>

<pallas_src>
import functools

import jax
import jax.numpy as jnp
from jax.experimental import pallas as pl
from jax.experimental.pallas import tpu as pltpu

_LANES = 128
_SUBLANES = 8


def _custom_loss_kernel(yp_ref, yt_ref, out_ref, *, tile_rows, num_cols, rows,
                        tiles_per_core, needs_row_mask):
    c = pl.program_id(0)          # parallel (TensorCore) axis
    j = pl.program_id(1)          # reduction (row-tile) axis

    @pl.when(j == 0)
    def _():
        out_ref[...] = jnp.zeros_like(out_ref)

    yp_raw = yp_ref[...]                                   # (tile_rows, 128)
    yt_raw = yt_ref[...]
    # |y_pred - y_true| in the wire dtype (packed bf16 VALU on v6e/v7x when the
    # inputs are bf16), then upcast; everything else stays in f32.
    diff = jnp.abs(yp_raw - yt_raw).astype(jnp.float32)
    yp = yp_raw.astype(jnp.float32)
    pen = yp - 0.5
    pen = pen * pen                                        # 1000x folded into the mask

    if num_cols >= 2:
        if _LANES % num_cols == 0:
            # Column depends only on the lane (divisors of 128 are powers of 2):
            # one (1,128) vreg of setup per step, broadcast over rows.
            lane = jax.lax.broadcasted_iota(jnp.int32, (1, _LANES), 1)
            col = jnp.bitwise_and(lane, num_cols - 1)
            mask1000 = jnp.where(col == 1, jnp.float32(1000.0), jnp.float32(0.0))
        else:
            # General C: overflow-safe flat-index mod (tile's starting offset is
            # reduced mod C as a scalar first; row indices are < total/128 < 2^26).
            row0 = (c * tiles_per_core + j) * tile_rows
            rid = jax.lax.broadcasted_iota(jnp.int32, (tile_rows, 1), 0)
            lane = jax.lax.broadcasted_iota(jnp.int32, (1, _LANES), 1)
            row_mod = (row0 % num_cols + rid) % num_cols
            col = (row_mod * (_LANES % num_cols) + lane) % num_cols
            mask1000 = jnp.where(col == 1, jnp.float32(1000.0), jnp.float32(0.0))
        d = diff + mask1000 * pen                          # FMA-style masked penalty
    else:
        d = diff                                           # no column 1 exists
    d2 = d * d

    if needs_row_mask:
        # Zero rows past the logical end (ragged last tile and/or blocks that the
        # clamped index_map re-reads when tiles don't split evenly across cores).
        row0 = (c * tiles_per_core + j) * tile_rows
        rid = jax.lax.broadcasted_iota(jnp.int32, (tile_rows, 1), 0) + row0
        d2 = jnp.where(rid < rows, d2, 0.0)

    # Fold tile rows onto the (8,128) accumulator held in the resident output
    # block: pure VPU vreg adds (no XLU in the loop).
    # TODO(synk): on v7x this row-fold could go to the idle MXU
    # (ones(1,tile_rows) @ d2); kept on the VPU to preserve exact f32 accumulation.
    folded = jnp.sum(d2.reshape(tile_rows // _SUBLANES, _SUBLANES, _LANES), axis=0)
    out_ref[...] += folded[None]


def custom_loss(y_pred, y_true, *, tile_rows=4096):
    """Pallas TPU equivalent of the PyTorch CustomLoss forward pass."""
    assert y_pred.shape == y_true.shape and y_pred.ndim == 2
    _, num_cols = y_pred.shape
    total = y_pred.shape[0] * num_cols

    if not jnp.issubdtype(y_pred.dtype, jnp.floating):
        y_pred = y_pred.astype(jnp.float32)
    if not jnp.issubdtype(y_true.dtype, jnp.floating):
        y_true = y_true.astype(jnp.float32)

    # Lane-dense (rows, 128) slab.  Hot path (total % 128 == 0): pure reshape,
    # no HBM copy.  Ragged tail: pad with 0.5 to the next multiple of 128 only.
    # |0.5-0.5| == 0 and (0.5-0.5)^2*1000 == 0, so padded elements contribute
    # exactly 0 -- do NOT change this constant (zero padding would add 250000
    # per padded column-1 slot).
    rem = total % _LANES
    pad = (_LANES - rem) % _LANES
    rows = (total + pad) // _LANES
    if rows < _SUBLANES:
        # Tiny input (<1 KiB): round up to one full (8,128) tile so the kernel's
        # row-fold stays uniform; the pad cost here is irrelevant.
        pad += (_SUBLANES - rows) * _LANES
        rows = _SUBLANES

    def to_slab(x):
        flat = x.reshape(-1)
        if pad:
            flat = jnp.concatenate(
                [flat, jnp.full((pad,), 0.5, dtype=flat.dtype)])
        return flat.reshape(rows, _LANES)

    yp2d = to_slab(y_pred)
    yt2d = to_slab(y_true)

    # Row tile: multiple of 8, never larger than the slab; only the last block
    # may be ragged (masked in-kernel).
    tile_req = max(_SUBLANES, (tile_rows // _SUBLANES) * _SUBLANES)
    tile_r = min(tile_req, (rows // _SUBLANES) * _SUBLANES)

    num_tiles = -(-rows // tile_r)
    num_parallel = 2 if num_tiles >= 2 else 1     # v7x dual-TC; plain loop on 1-TC chips
    tiles_per_core = -(-num_tiles // num_parallel)
    needs_row_mask = (num_parallel * tiles_per_core * tile_r) != rows

    def in_map(c, j):
        # Clamp so blocks past the end re-read the last tile; their contribution
        # is zeroed by the in-kernel row-validity mask.
        return (jnp.minimum(c * tiles_per_core + j, num_tiles - 1), 0)

    kernel = functools.partial(
        _custom_loss_kernel, tile_rows=tile_r, num_cols=num_cols, rows=rows,
        tiles_per_core=tiles_per_core, needs_row_mask=needs_row_mask)

    itemsize = max(jnp.dtype(yp2d.dtype).itemsize, jnp.dtype(yt2d.dtype).itemsize)
    vmem_limit = min(64 * 1024 * 1024,
                     max(32 * 1024 * 1024,
                         2 * 2 * tile_r * _LANES * itemsize + 4 * 1024 * 1024))

    partials = pl.pallas_call(
        kernel,
        out_shape=jax.ShapeDtypeStruct((num_parallel, _SUBLANES, _LANES),
                                       jnp.float32),
        grid_spec=pltpu.PrefetchScalarGridSpec(
            num_scalar_prefetch=0,
            grid=(num_parallel, tiles_per_core),
            in_specs=[
                pl.BlockSpec((tile_r, _LANES), in_map),
                pl.BlockSpec((tile_r, _LANES), in_map),
            ],
            out_specs=pl.BlockSpec((1, _SUBLANES, _LANES),
                                   lambda c, j: (c, 0, 0)),
        ),
        compiler_params=pltpu.CompilerParams(
            dimension_semantics=("parallel", "arbitrary"),
            vmem_limit_bytes=vmem_limit),
    )(yp2d, yt2d)

    # Tiny final cross-core/cross-lane collapse + sqrt (<= 2*8*128 f32).
    return jnp.sqrt(jnp.sum(partials))


if __name__ == "__main__":
    key = jax.random.PRNGKey(0)
    ks = jax.random.split(key, 8)

    def reference(yp, yt):
        yp = yp.astype(jnp.float32)
        yt = yt.astype(jnp.float32)
        err = jnp.abs(yp - yt)
        err = err.at[:, 1].add((yp[:, 1] - 0.5) ** 2 * 1000.0)
        return jnp.sqrt(jnp.sum(err * err))   # .mean() on a scalar is identity

    # 1) Small shape matching the module's [batch, feature] layout (padded tail,
    #    single (8,128) tile).
    N, C = 8, 4
    y_pred = jax.random.uniform(ks[0], (N, C), dtype=jnp.float32)
    y_true = jax.random.uniform(ks[1], (N, C), dtype=jnp.float32)
    loss = custom_loss(y_pred, y_true)
    jax.block_until_ready(loss)
    ref = reference(y_pred, y_true)
    assert jnp.allclose(loss, ref, rtol=1e-5, atol=1e-5), (loss, ref)

    # 2) Ragged tail + multi-tile grid + 2-way parallel split + row masking.
    N2, C2 = 300, 4
    yp2 = jax.random.uniform(ks[2], (N2, C2), dtype=jnp.float32)
    yt2 = jax.random.uniform(ks[3], (N2, C2), dtype=jnp.float32)
    loss2 = custom_loss(yp2, yt2, tile_rows=8)
    jax.block_until_ready(loss2)
    ref2 = reference(yp2, yt2)
    assert jnp.allclose(loss2, ref2, rtol=1e-4, atol=1e-4), (loss2, ref2)

    # 3) Copy-free hot path: total % 128 == 0, even tile split, no masking.
    N3, C3 = 1024, 4
    yp3 = jax.random.uniform(ks[4], (N3, C3), dtype=jnp.float32)
    yt3 = jax.random.uniform(ks[5], (N3, C3), dtype=jnp.float32)
    loss3 = custom_loss(yp3, yt3, tile_rows=8)
    jax.block_until_ready(loss3)
    ref3 = reference(yp3, yt3)
    assert jnp.allclose(loss3, ref3, rtol=1e-4, atol=1e-4), (loss3, ref3)

    # 4) bf16 wire dtype (sub/abs in packed bf16 vregs, f32 accumulate).
    yp4 = jax.random.uniform(ks[6], (256, 4), dtype=jnp.float32).astype(jnp.bfloat16)
    yt4 = jax.random.uniform(ks[7], (256, 4), dtype=jnp.float32).astype(jnp.bfloat16)
    loss4 = custom_loss(yp4, yt4)
    jax.block_until_ready(loss4)
    ref4 = reference(yp4, yt4)
    assert jnp.allclose(loss4, ref4, rtol=2e-2, atol=1e-2), (loss4, ref4)

    print("KERNEL_OK")
</pallas_src>

<mosaic_0001>
module attributes {stable_mosaic.version = 11 : i64} {
  func.func @_custom_loss_kernel(%arg0: i32, %arg1: i32, %arg2: memref<8x128xf32, #tpu.memory_space<vmem>>, %arg3: memref<8x128xf32, #tpu.memory_space<vmem>>, %arg4: memref<1x8x128xf32, #tpu.memory_space<vmem>>) attributes {dimension_semantics = [#tpu.dimension_semantics<parallel>, #tpu.dimension_semantics<arbitrary>], iteration_bounds = array<i64: 1, 1>, scalar_prefetch = 0 : i64, scratch_operands = 0 : i64, tpu.core_type = #tpu.core_type<tc>, window_params = [{transform_indices = @transform_0, window_bounds = array<i64: 8, 128>}, {transform_indices = @transform_1, window_bounds = array<i64: 8, 128>}, {transform_indices = @transform_2, window_bounds = array<i64: 1, 8, 128>}]} {
    %c0_i32 = arith.constant 0 : i32
    %0 = arith.cmpi eq, %arg1, %c0_i32 : i32
    %1 = arith.extui %0 : i1 to i32
    %c0_i32_0 = arith.constant 0 : i32
    %2 = arith.cmpi ne, %1, %c0_i32_0 : i32
    scf.if %2 {
      %cst_13 = arith.constant 0.000000e+00 : f32
      %28 = vector.broadcast %cst_13 : f32 to vector<1x8x128xf32>
      %c0_14 = arith.constant 0 : index
      %c0_15 = arith.constant 0 : index
      %c0_16 = arith.constant 0 : index
      %29 = vector.load %arg4[%c0_14, %c0_15, %c0_16] : memref<1x8x128xf32, #tpu.memory_space<vmem>>, vector<1x8x128xf32>
      tpu.vector_store %arg4[%c0_14, %c0_15, %c0_16], %28 {strides = array<i32>} : memref<1x8x128xf32, #tpu.memory_space<vmem>>, vector<1x8x128xf32>,
    } else {
    }
    %c0 = arith.constant 0 : index
    %c0_1 = arith.constant 0 : index
    %3 = vector.load %arg2[%c0, %c0_1] : memref<8x128xf32, #tpu.memory_space<vmem>>, vector<8x128xf32>
    %c0_2 = arith.constant 0 : index
    %c0_3 = arith.constant 0 : index
    %4 = vector.load %arg3[%c0_2, %c0_3] : memref<8x128xf32, #tpu.memory_space<vmem>>, vector<8x128xf32>
    %5 = arith.subf %3, %4 : vector<8x128xf32>
    %6 = math.absf %5 : vector<8x128xf32>
    %cst = arith.constant 5.000000e-01 : f32
    %7 = vector.broadcast %cst : f32 to vector<8x128xf32>
    %8 = arith.subf %3, %7 : vector<8x128xf32>
    %9 = arith.mulf %8, %8 : vector<8x128xf32>
    %10 = tpu.iota {dimensions = array<i32: 1>} : vector<1x128xi32>
    %c3_i32 = arith.constant 3 : i32
    %11 = vector.broadcast %c3_i32 : i32 to vector<1x128xi32>
    %12 = arith.andi %10, %11 : vector<1x128xi32>
    %c1_i32 = arith.constant 1 : i32
    %13 = vector.broadcast %c1_i32 : i32 to vector<1x128xi32>
    %14 = arith.cmpi eq, %12, %13 : vector<1x128xi32>
    %cst_4 = arith.constant 1.000000e+03 : f32
    %cst_5 = arith.constant 0.000000e+00 : f32
    %15 = vector.broadcast %cst_4 : f32 to vector<1x128xf32>
    %16 = vector.broadcast %cst_5 : f32 to vector<1x128xf32>
    %17 = arith.select %14, %15, %16 : vector<1x128xi1>, vector<1x128xf32>
    %18 = vector.broadcast %17 : vector<1x128xf32> to vector<8x128xf32>
    %19 = arith.mulf %18, %9 : vector<8x128xf32>
    %20 = arith.addf %6, %19 : vector<8x128xf32>
    %21 = arith.mulf %20, %20 : vector<8x128xf32>
    %22 = vector.shape_cast %21 : vector<8x128xf32> to vector<1x8x128xf32>
    %cst_6 = arith.constant dense<0.000000e+00> : vector<8x128xf32>
    %23 = vector.multi_reduction <add>, %22, %cst_6 [0] : vector<1x8x128xf32> to vector<8x128xf32>
    %c0_7 = arith.constant 0 : index
    %c0_8 = arith.constant 0 : index
    %c0_9 = arith.constant 0 : index
    %24 = vector.load %arg4[%c0_7, %c0_8, %c0_9] : memref<1x8x128xf32, #tpu.memory_space<vmem>>, vector<1x8x128xf32>
    %25 = vector.shape_cast %23 : vector<8x128xf32> to vector<1x8x128xf32>
    %26 = arith.addf %24, %25 : vector<1x8x128xf32>
    %c0_10 = arith.constant 0 : index
    %c0_11 = arith.constant 0 : index
    %c0_12 = arith.constant 0 : index
    %27 = vector.load %arg4[%c0_10, %c0_11, %c0_12] : memref<1x8x128xf32, #tpu.memory_space<vmem>>, vector<1x8x128xf32>
    tpu.vector_store %arg4[%c0_10, %c0_11, %c0_12], %26 {strides = array<i32>} : memref<1x8x128xf32, #tpu.memory_space<vmem>>, vector<1x8x128xf32>,
    return
  }
  func.func @transform_0(%arg0: i32, %arg1: i32) -> (i32, i32) {
    %c1_i32 = arith.constant 1 : i32
    %0 = arith.muli %arg0, %c1_i32 : i32
    %1 = arith.addi %0, %arg1 : i32
    %c0_i32 = arith.constant 0 : i32
    %2 = arith.minsi %1, %c0_i32 : i32
    %c0_i32_0 = arith.constant 0 : i32
    %c0_i32_1 = arith.constant 0 : i32
    return %2, %c0_i32_0 : i32, i32
  }
  func.func @transform_1(%arg0: i32, %arg1: i32) -> (i32, i32) {
    %c1_i32 = arith.constant 1 : i32
    %0 = arith.muli %arg0, %c1_i32 : i32
    %1 = arith.addi %0, %arg1 : i32
    %c0_i32 = arith.constant 0 : i32
    %2 = arith.minsi %1, %c0_i32 : i32
    %c0_i32_0 = arith.constant 0 : i32
    %c0_i32_1 = arith.constant 0 : i32
    return %2, %c0_i32_0 : i32, i32
  }
  func.func @transform_2(%arg0: i32, %arg1: i32) -> (i32, i32, i32) {
    %c0_i32 = arith.constant 0 : i32
    %c0_i32_0 = arith.constant 0 : i32
    %c0_i32_1 = arith.constant 0 : i32
    return %arg0, %c0_i32, %c0_i32_0 : i32, i32, i32
  }
}

</mosaic_0001>

<bundles_post_ra>
// kernel: tpu_custom_call.1
= control target key start
LH: loop header
LB: loop body
LE: loop exit
PB: predicated region body
PF: predicated region fallthrough
CT: control target
= control target key end

     0   :  { %7 = vsyncpa [#allocation3], 0  ;;  %s194_s0 = inlined_call_operand.hbm [shape: f32[8,128], index: 0, kind: input, shape index: {}]   ;;  %s195_s1 = inlined_call_operand.hbm [shape: f32[8,128], index: 1, kind: input, shape index: {}]   ;;  %s196_s2 = inlined_call_operand.hbm [shape: f32[1,8,128], index: 2, kind: output, shape index: {}]  }
   0x1   :  { %8 = vsyncpa [#allocation6], 0 }
   0x2   :  { %9 = vsyncpa [#allocation4], 0  ;;  %s166_s9 = smov [#allocation2]   ;;  %s167_s11 = smov [#allocation5]  }
   0x3   :  { %s21_s10 = sshll.u32 %s166_s9, 4  ;;  %s36_s12 = sshll.u32 %s167_s11, 4  ;;  %s22_s10 = int_to_ptr.vmem [resolvable:$true] %s21_s10  ;;  %s37_s12 = int_to_ptr.vmem [resolvable:$true] %s36_s12 }
   0x4   :  { %s108_s13 = scalar_lea.vmem %s22_s10, 128  ;;  %p113_p1 = scmp.lt.s32.totalorder %s22_s10, %s22_s10 }
   0x5   :  { %p109_p0 = scmp.ne.s32.totalorder %s22_s10, %s108_s13  ;;  %p114_p2 = scmp.lt.s32.totalorder %s108_s13, %s108_s13 }
   0x7   :  { %p115_p3 = por %p114_p2, %p113_p1 }
   0x9   :  { %p116_p4 = pnand %p115_p3, %p109_p0 }
   0xb   :  { %119 = shalt.err (!%p116_p4)
}
   0xc   :  { %24 = dma.hbm_to_vmem [thread:$0]  %s194_s0, 128, %s22_s10, [#allocation3]  }
   0xd   :  { %s128_s16 = scalar_lea.vmem %s37_s12, 128  ;;  %p133_p6 = scmp.lt.s32.totalorder %s37_s12, %s37_s12 }
   0xe   :  { %p129_p5 = scmp.ne.s32.totalorder %s37_s12, %s128_s16  ;;  %p134_p7 = scmp.lt.s32.totalorder %s128_s16, %s128_s16 }
  0x10   :  { %p135_p8 = por %p134_p7, %p133_p6 }
  0x12   :  { %p136_p9 = pnand %p135_p8, %p129_p5 }
  0x14   :  { %139 = shalt.err (!%p136_p9)
}
  0x15   :  { %39 = dma.hbm_to_vmem [thread:$0]  %s195_s1, 128, %s37_s12, [#allocation6]  }
  0x16   :  { %160 = dma.done.wait [#allocation3], 128  }
  0x17   :  { %161 = vsyncadd [#allocation3], 4294967168 }
  0x18   :  { %162 = dma.done.wait [#allocation6], 128  }
  0x19   :  { %163 = vsyncadd [#allocation6], 4294967168  ;;  %v63_v0 = vlaneseq  ;;  %v57_v3 = vld [vmem:[#allocation2] sm:$0xff]  ;;  %v58_v4 = vld [vmem:[#allocation5] sm:$0xff]  ;;  %v168_v7 = vmov 0.0   ;;  %s169_s0 = smov [#allocation7]  }
  0x1a   :  { %v59_v5 = vsub.f32 %v57_v3, %v58_v4  ;;  %v95_v6 = vadd.f32 -0.5, %v57_v3  ;;  %s81_s1 = sshll.u32 %s169_s0, 4  ;;  %s82_s1 = int_to_ptr.vmem [resolvable:$true] %s81_s1 }
  0x1b   :  { %v64_v1 = vand.u32 127, %v63_v0  ;;  %s140_s19 = scalar_lea.vmem %s82_s1, 128  ;;  %p145_p11 = scmp.lt.s32.totalorder %s82_s1, %s82_s1 }
  0x1c   :  { %v60_v9 = vand.u32 2147483647, %v59_v5  ;;  %v62_v10 = vmul.f32 %v95_v6, %v95_v6  ;;  %p141_p10 = scmp.ne.s32.totalorder %s82_s1, %s140_s19  ;;  %p146_p12 = scmp.lt.s32.totalorder %s140_s19, %s140_s19 }
  0x1d   :  { %v65_v2 = vand.u32 3, %v64_v1 }
  0x1e   :  { %p147_p13 = por %p146_p12, %p145_p11 }
  0x1f   :  { %vm66_vm0 = vcmp.eq.s32.totalorder %v65_v2, 1 }
  0x20   :  { %v67_v8 = vsel %vm66_vm0, 1000.0, %v168_v7  ;;  %p148_p0 = pnand %p147_p13, %p141_p10 }
  0x21   :  { %v68_v11 = vmul.f32 %v67_v8, %v62_v10 }
  0x23   :  { %v69_v12 = vadd.f32 %v68_v11, %v60_v9 }
  0x25   :  { %v70_v13 = vmul.f32 %v69_v12, %v69_v12 }
  0x27   :  { %74 = vst [vmem:[#allocation7] sm:$0xff] %v70_v13 }
  0x28   :  { %151 = shalt.err (!%p148_p0)
}
  0x29   :  { %84 = dma.vmem_to_hbm [thread:$0]  %s82_s1, 128, %s196_s2, [#allocation4]  }
  0x2a   :  { %164 = dma.done.wait [#allocation4], 128  }
  0x2b   :  { %165 = vsyncadd [#allocation4], 4294967168 }
  0x2c   :  { %88 = vsyncpa [#allocation3], 1 }
  0x2d   :  { %89 = vsyncpa [#allocation6], 1 }
  0x2e   :  { %90 = vsyncpa [#allocation4], 1 }

</bundles_post_ra>
